<compile_context>
chip_gen: v7x
topology: tpu7x:2x2x1
jax: 0.10.0
libtpu: 0.0.40
codegen_flags: <defaults>
</compile_context>

<pallas_src>
import functools
import math

import jax
import jax.numpy as jnp
from jax.experimental import pallas as pl
from jax.experimental.pallas import tpu as pltpu

_LOG_EPS = math.log(1e-8)


def _focal_loss_kernel(yhat_ref, y_ref, w_ref, out_ref, *, gamma):
    x = yhat_ref[...].astype(jnp.float32)   # (C, tsub, 128)
    t = y_ref[...].astype(jnp.float32)      # (C, tsub, 128)
    w = w_ref[...].astype(jnp.float32)      # (C, 1, 1) -> broadcasts per channel

    # Numerically-stable softmax over the channel axis.  Channels sit on a
    # leading (non-vreg) dim, so the max/sum reductions and the broadcasts
    # below are pure elementwise VPU ops across C fully-packed vreg slabs.
    m = jnp.max(x, axis=0, keepdims=True)          # (1, tsub, 128)
    xs = x - m                                     # (C, tsub, 128)
    e = jnp.exp(xs)                                # only per-element transcendental
    s = jnp.sum(e, axis=0, keepdims=True)          # (1, tsub, 128)
    inv_s = pl.reciprocal(s, approx=False)         # per-lane, exact

    p = jnp.clip(e * inv_s, 1e-8, 1.0 - 1e-8)      # (C, tsub, 128)
    # log(clip(p, 1e-8, 1-1e-8)) == clip(log_softmax(x), log(1e-8), 0) in f32
    # (1 - 1e-8 rounds to 1.0 in f32, so the upper clamp is log(1.0) = 0).
    log_p = jnp.clip(xs - jnp.log(s), _LOG_EPS, 0.0)

    one_minus_p = 1.0 - p
    g = float(gamma)
    if g == 2.0:                                   # default: plain square, no pow
        focal = one_minus_p * one_minus_p
    elif g.is_integer() and 0.0 <= g <= 8.0:       # small integer exponents
        focal = jnp.ones_like(one_minus_p)
        for _ in range(int(g)):
            focal = focal * one_minus_p
    else:                                          # general float exponent
        focal = one_minus_p ** g

    loss = (-t * w) * (focal * log_p)              # (C, tsub, 128)

    # Channel sum = elementwise adds; then one small sublane reduce to (1, 128).
    lane = jnp.sum(loss, axis=0)                   # (tsub, 128)
    out_ref[...] = jnp.sum(lane, axis=0, keepdims=True)   # (1, 128)


def focal_loss(y_hat, y, weight, gamma=2.0, tsub=None):
    """y_hat, y: (N, C, H, W).  weight: (C,).  Returns mean focal loss."""
    N, C, H, W = y_hat.shape
    HW = H * W
    total = N * C * HW

    # Weight normalization, as the module's __init__ does.
    w32 = weight.astype(jnp.float32)
    w = (w32 / jnp.linalg.norm(w32)).reshape(C, 1, 1)

    # Spatial is laid out as (rows, 128): rows on sublanes, 128 on lanes.
    rows = pl.cdiv(HW, 128)

    # Sublane-tile: keep one (C, tsub, 128) f32 block around ~1 MiB, cap 512,
    # floor 8, and never bigger than the (8-rounded) spatial extent.
    if tsub is None:
        tsub = min(512, max(8, (2048 // max(C, 1)) // 8 * 8))
    tsub = max(8, (int(tsub) // 8) * 8)
    tsub = min(tsub, ((rows + 7) // 8) * 8)

    rows_padded = ((rows + tsub - 1) // tsub) * tsub
    pad = rows_padded * 128 - HW
    ntiles = rows_padded // tsub

    # Free reshape (no transpose); keep native dtype, kernel upcasts in VMEM.
    x = y_hat.reshape(N, C, HW)
    t = y.reshape(N, C, HW)
    if pad:
        # Zero-padded positions contribute exactly 0 loss (t == 0 there).
        x = jnp.pad(x, ((0, 0), (0, 0), (0, pad)))
        t = jnp.pad(t, ((0, 0), (0, 0), (0, pad)))
    x = x.reshape(N, C, rows_padded, 128)
    t = t.reshape(N, C, rows_padded, 128)

    kernel = functools.partial(_focal_loss_kernel, gamma=float(gamma))

    partials = pl.pallas_call(
        kernel,
        out_shape=jax.ShapeDtypeStruct((N, ntiles, 1, 128), jnp.float32),
        grid_spec=pltpu.PrefetchScalarGridSpec(
            num_scalar_prefetch=0,
            grid=(N, ntiles),
            in_specs=[
                pl.BlockSpec((pl.Squeezed(), C, tsub, 128),
                             lambda i, j: (i, 0, j, 0)),
                pl.BlockSpec((pl.Squeezed(), C, tsub, 128),
                             lambda i, j: (i, 0, j, 0)),
                pl.BlockSpec((C, 1, 1), lambda i, j: (0, 0, 0)),
            ],
            out_specs=pl.BlockSpec((pl.Squeezed(), pl.Squeezed(), 1, 128),
                                   lambda i, j: (i, j, 0, 0)),
        ),
        compiler_params=pltpu.CompilerParams(
            dimension_semantics=("parallel", "parallel")),
    )(x, t, w)

    # Tiny final reduction + mean normalization in the wrapper.
    return jnp.sum(partials) / jnp.float32(total)


def _focal_loss_ref(y_hat, y, weight, gamma=2.0):
    w = weight / jnp.linalg.norm(weight)
    w = w.reshape(1, -1, 1, 1)
    p = jnp.clip(jax.nn.softmax(y_hat.astype(jnp.float32), axis=1),
                 1e-8, 1.0 - 1e-8)
    loss = -y.astype(jnp.float32) * ((1.0 - p) ** gamma) * jnp.log(p)
    loss = loss * w
    return jnp.mean(loss)


if __name__ == "__main__":
    key = jax.random.PRNGKey(0)
    k1, k2 = jax.random.split(key)

    N, C, H, W = 2, 4, 16, 16
    y_hat = jax.random.normal(k1, (N, C, H, W), dtype=jnp.float32)
    labels = jax.random.randint(k2, (N, H, W), 0, C)
    y = jax.nn.one_hot(labels, C, axis=1, dtype=jnp.float32)  # (N, C, H, W)

    weight = jnp.array([1.0, 2.0, 0.5, 1.0], dtype=jnp.float32)

    out = focal_loss(y_hat, y, weight, gamma=2.0)
    out = jax.block_until_ready(out)

    ref = _focal_loss_ref(y_hat, y, weight, gamma=2.0)
    assert jnp.allclose(out, ref, rtol=1e-5, atol=1e-6), (out, ref)

    print("KERNEL_OK")
</pallas_src>

<mosaic_0001>
module attributes {stable_mosaic.version = 11 : i64} {
  func.func @_focal_loss_kernel(%arg0: i32, %arg1: i32, %arg2: memref<1x4x8x128xf32, #tpu.memory_space<vmem>>, %arg3: memref<1x4x8x128xf32, #tpu.memory_space<vmem>>, %arg4: memref<4x1x1xf32, #tpu.memory_space<vmem>>, %arg5: memref<1x1x1x128xf32, #tpu.memory_space<vmem>>) attributes {dimension_semantics = [#tpu.dimension_semantics<parallel>, #tpu.dimension_semantics<parallel>], iteration_bounds = array<i64: 2, 1>, scalar_prefetch = 0 : i64, scratch_operands = 0 : i64, tpu.core_type = #tpu.core_type<tc>, window_params = [{transform_indices = @transform_0, window_bounds = array<i64: 1, 4, 8, 128>}, {transform_indices = @transform_1, window_bounds = array<i64: 1, 4, 8, 128>}, {pipeline_mode = #tpu.pipeline_mode<synchronous>, transform_indices = @transform_2, window_bounds = array<i64: 4, 1, 1>}, {transform_indices = @transform_3, window_bounds = array<i64: 1, 1, 1, 128>}]} {
    %c0 = arith.constant 0 : index
    %c0_0 = arith.constant 0 : index
    %c0_1 = arith.constant 0 : index
    %c0_2 = arith.constant 0 : index
    %0 = vector.load %arg2[%c0, %c0_0, %c0_1, %c0_2] : memref<1x4x8x128xf32, #tpu.memory_space<vmem>>, vector<1x4x8x128xf32>
    %1 = vector.shape_cast %0 : vector<1x4x8x128xf32> to vector<4x8x128xf32>
    %c0_3 = arith.constant 0 : index
    %c0_4 = arith.constant 0 : index
    %c0_5 = arith.constant 0 : index
    %c0_6 = arith.constant 0 : index
    %2 = vector.load %arg3[%c0_3, %c0_4, %c0_5, %c0_6] : memref<1x4x8x128xf32, #tpu.memory_space<vmem>>, vector<1x4x8x128xf32>
    %3 = vector.shape_cast %2 : vector<1x4x8x128xf32> to vector<4x8x128xf32>
    %c0_7 = arith.constant 0 : index
    %c0_8 = arith.constant 0 : index
    %c0_9 = arith.constant 0 : index
    %4 = vector.load %arg4[%c0_7, %c0_8, %c0_9] : memref<4x1x1xf32, #tpu.memory_space<vmem>>, vector<4x1x1xf32>
    %cst = arith.constant dense<0xFF800000> : vector<8x128xf32>
    %5 = vector.multi_reduction <maximumf>, %1, %cst [0] : vector<4x8x128xf32> to vector<8x128xf32>
    %6 = vector.shape_cast %5 : vector<8x128xf32> to vector<1x8x128xf32>
    %7 = vector.broadcast %6 : vector<1x8x128xf32> to vector<4x8x128xf32>
    %8 = arith.subf %1, %7 : vector<4x8x128xf32>
    %9 = math.exp %8 : vector<4x8x128xf32>
    %cst_10 = arith.constant dense<0.000000e+00> : vector<8x128xf32>
    %10 = vector.multi_reduction <add>, %9, %cst_10 [0] : vector<4x8x128xf32> to vector<8x128xf32>
    %11 = vector.shape_cast %10 : vector<8x128xf32> to vector<1x8x128xf32>
    %12 = tpu.reciprocal %11 : vector<1x8x128xf32> -> vector<1x8x128xf32>
    %13 = vector.broadcast %12 : vector<1x8x128xf32> to vector<4x8x128xf32>
    %14 = arith.mulf %9, %13 : vector<4x8x128xf32>
    %cst_11 = arith.constant 9.99999993E-9 : f32
    %cst_12 = arith.constant 1.000000e+00 : f32
    %15 = vector.broadcast %cst_11 : f32 to vector<4x8x128xf32>
    %16 = arith.maximumf %15, %14 : vector<4x8x128xf32>
    %17 = vector.broadcast %cst_12 : f32 to vector<4x8x128xf32>
    %18 = arith.minimumf %17, %16 : vector<4x8x128xf32>
    %19 = math.log %11 : vector<1x8x128xf32>
    %20 = vector.broadcast %19 : vector<1x8x128xf32> to vector<4x8x128xf32>
    %21 = arith.subf %8, %20 : vector<4x8x128xf32>
    %cst_13 = arith.constant -18.420681 : f32
    %cst_14 = arith.constant 0.000000e+00 : f32
    %22 = vector.broadcast %cst_13 : f32 to vector<4x8x128xf32>
    %23 = arith.maximumf %22, %21 : vector<4x8x128xf32>
    %24 = vector.broadcast %cst_14 : f32 to vector<4x8x128xf32>
    %25 = arith.minimumf %24, %23 : vector<4x8x128xf32>
    %cst_15 = arith.constant 1.000000e+00 : f32
    %26 = vector.broadcast %cst_15 : f32 to vector<4x8x128xf32>
    %27 = arith.subf %26, %18 : vector<4x8x128xf32>
    %28 = arith.mulf %27, %27 : vector<4x8x128xf32>
    %cst_16 = arith.constant 0.000000e+00 : f32
    %29 = vector.broadcast %cst_16 : f32 to vector<4x8x128xf32>
    %30 = arith.subf %29, %3 : vector<4x8x128xf32>
    %31 = vector.broadcast %4 : vector<4x1x1xf32> to vector<4x8x128xf32>
    %32 = arith.mulf %30, %31 : vector<4x8x128xf32>
    %33 = arith.mulf %28, %25 : vector<4x8x128xf32>
    %34 = arith.mulf %32, %33 : vector<4x8x128xf32>
    %cst_17 = arith.constant dense<0.000000e+00> : vector<8x128xf32>
    %35 = vector.multi_reduction <add>, %34, %cst_17 [0] : vector<4x8x128xf32> to vector<8x128xf32>
    %cst_18 = arith.constant dense<0.000000e+00> : vector<128xf32>
    %36 = vector.multi_reduction <add>, %35, %cst_18 [0] : vector<8x128xf32> to vector<128xf32>
    %37 = vector.shape_cast %36 : vector<128xf32> to vector<1x128xf32>
    %c0_19 = arith.constant 0 : index
    %c0_20 = arith.constant 0 : index
    %c0_21 = arith.constant 0 : index
    %c0_22 = arith.constant 0 : index
    %38 = vector.load %arg5[%c0_19, %c0_20, %c0_21, %c0_22] : memref<1x1x1x128xf32, #tpu.memory_space<vmem>>, vector<1x1x1x128xf32>
    %39 = vector.shape_cast %38 : vector<1x1x1x128xf32> to vector<1x128xf32>
    %40 = vector.shape_cast %37 : vector<1x128xf32> to vector<1x1x1x128xf32>
    tpu.vector_store %arg5[%c0_19, %c0_20, %c0_21, %c0_22], %40 {strides = array<i32>} : memref<1x1x1x128xf32, #tpu.memory_space<vmem>>, vector<1x1x1x128xf32>,
    return
  }
  func.func @transform_0(%arg0: i32, %arg1: i32) -> (i32, i32, i32, i32) {
    %c0_i32 = arith.constant 0 : i32
    %c0_i32_0 = arith.constant 0 : i32
    %c0_i32_1 = arith.constant 0 : i32
    return %arg0, %c0_i32, %arg1, %c0_i32_0 : i32, i32, i32, i32
  }
  func.func @transform_1(%arg0: i32, %arg1: i32) -> (i32, i32, i32, i32) {
    %c0_i32 = arith.constant 0 : i32
    %c0_i32_0 = arith.constant 0 : i32
    %c0_i32_1 = arith.constant 0 : i32
    return %arg0, %c0_i32, %arg1, %c0_i32_0 : i32, i32, i32, i32
  }
  func.func @transform_2(%arg0: i32, %arg1: i32) -> (i32, i32, i32) {
    %c0_i32 = arith.constant 0 : i32
    %c0_i32_0 = arith.constant 0 : i32
    %c0_i32_1 = arith.constant 0 : i32
    %c0_i32_2 = arith.constant 0 : i32
    return %c0_i32, %c0_i32_0, %c0_i32_1 : i32, i32, i32
  }
  func.func @transform_3(%arg0: i32, %arg1: i32) -> (i32, i32, i32, i32) {
    %c0_i32 = arith.constant 0 : i32
    %c0_i32_0 = arith.constant 0 : i32
    %c0_i32_1 = arith.constant 0 : i32
    return %arg0, %arg1, %c0_i32, %c0_i32_0 : i32, i32, i32, i32
  }
}

</mosaic_0001>

<bundles_post_ra>
// kernel: tpu_custom_call.1
= control target key start
LH: loop header
LB: loop body
LE: loop exit
PB: predicated region body
PF: predicated region fallthrough
CT: control target
= control target key end

     0   :  { %8 = vsyncpa [#allocation3], 0  ;;  %s1024_s0 = inlined_call_operand.hbm [shape: f32[2,4,8,128], index: 0, kind: input, shape index: {}]   ;;  %s1025_s1 = inlined_call_operand.hbm [shape: f32[2,4,8,128], index: 1, kind: input, shape index: {}]   ;;  %s1026_s2 = inlined_call_operand.vmem [shape: f32[4,1,1], index: 2, kind: input, shape index: {}]   ;;  %s1027_s3 = inlined_call_operand.hbm [shape: f32[2,1,1,128], index: 3, kind: output, shape index: {}]  }
   0x1   :  { %10 = vsyncpa [#allocation3 + $0x1], 0 }
   0x2   :  { %11 = vsyncpa [#allocation6], 0 }
   0x3   :  { %13 = vsyncpa [#allocation6 + $0x1], 0 }
   0x4   :  { %14 = vsyncpa [#allocation4], 0 }
   0x5   :  { %16 = vsyncpa [#allocation4 + $0x1], 0  ;;  %s771_s12 = smov 0   ;;  %s773_s13 = smov 0  }
   0x6   :  { %s775_s14 = smov 0   ;;  %s777_s15 = smov 0  }
   0x7   :  { %s779_s16 = smov 0   ;;  %s781_s17 = smov 0  }
   0x8 LB: > { %s491_s18 = sadd.s32 4294967295, %s743_s17   ;;  %s492_s19 = sadd.s32 4294967294, %s743_s17   ;;  %s743_s17 = sphi %s781_s17, %s22_s17   ;;  %s739_s16 = sphi %s779_s16, %s1045_s16   ;;  %s735_s15 = sphi %s777_s15, %s1044_s15   ;;  %s731_s14 = sphi %s775_s14, %s1043_s14   ;;  %s727_s13 = sphi %s773_s13, %s1042_s13   ;;  %s723_s12 = sphi %s771_s12, %s1041_s12  }
   0x9   : > { %s34_s20 = sadd.s32 1, %s739_s16  ;;  %s43_s21 = sadd.s32 1, %s731_s14 }
   0xa   : > { %p36_p0 = scmp.ge.s32.totalorder %s34_s20, 2  ;;  %p50_p1 = scmp.ne.s32.totalorder %s731_s14, %s727_s13 }
   0xb   : > { %p51_p2 = scmp.eq.s32.totalorder %s743_s17, 0  ;;  %p56_p3 = scmp.ne.s32.totalorder %s727_s13, %s723_s12 }
   0xc   : > { %s1047_s20 = smov (%p36_p0, %s34_s20), 0  ;;  %p57_p5 = scmp.eq.s32.totalorder %s491_s18, 0 }
   0xd   : > { %p812_p4 = por %p51_p2, %p50_p1  ;;  %s38_s23 = ssub.s32 %s739_s16, %s1047_s20 }
   0xe   : > { %p131_p6 = scmp.eq.s32.totalorder %s491_s18, 1  ;;  %p41_p7 = scmp.eq.s32.totalorder %s38_s23, 0 }
   0xf   : > { %p818_p8 = por %p57_p5, %p56_p3  ;;  %p137_p10 = scmp.eq.s32.totalorder %s492_s19, 1 }
  0x10   : > { %p822_p9 = por %p131_p6, %p50_p1  ;;  %p530_p13 = scmp.lt.s32.totalorder %s743_s17, 2 }
  0x11   : > { %s1031_s24 = scalar_select %p818_p8, 1, 0 }
  0x12   : > { %s1032_s25 = scalar_select %p822_p9, 1, 0 }
  0x13   : > { %s827_s26 = scalar_select %p41_p7, %s731_s14, %s43_s21  }
  0x14   : > { %p829_p11 = por %p137_p10, %p56_p3  ;;  %s836_s28 = sand.u32 1, %s731_s14  }
  0x15   : > { %s495_s29 = sshll.u32 %s836_s28, 5  ;;  %s511_s30 = sshll.u32 %s739_s16, 9 }
  0x16   : > { %s1033_s27 = scalar_select %p829_p11, 1, 0 }
  0x17   : > { %s845_s6 = scalar_lea.hbm %s1024_s0, %s511_s30  ;;  %s164_s7 = scalar_lea.vmem [#allocation2], %s495_s29 }
  0x18   : > { %s172_s8 = sshll.u32 %s164_s7, 4  ;;  %p853_p0 = pnand %p530_p13, %p812_p4  ;;  %s849_s8 = int_to_ptr.vmem [resolvable:$true] %s172_s8 }
  0x19   : > { %s161_s10 = scalar_lea.sflag [#allocation3], %s836_s28  ;;  %s597_s11 = scalar_lea.hbm %s845_s6, 512 }
  0x1a   : > { %p598_p2 = scmp.ne.s32.totalorder %s845_s6, %s597_s11  ;;  %p599_p3 = pneg %p853_p0 }
  0x1b   : > { %s602_s21 = scalar_lea.hbm %s1024_s0, 1024  ;;  %p603_p4 = scmp.lt.u32.totalorder %s845_s6, %s1024_s0 }
  0x1c   : > { %p600_p5 = pnand %p599_p3, %p598_p2  ;;  %p604_p7 = scmp.lt.u32.totalorder %s602_s21, %s597_s11 }
  0x1d   : > { %p606_p13 = scmp.lt.u32.totalorder %s597_s11, %s845_s6 }
  0x1e   : > { %p601_p6 = pneg %p600_p5  ;;  %p605_p10 = por %p604_p7, %p603_p4 }
  0x20   : > { %p607_p12 = por %p606_p13, %p605_p10 }
  0x22   : > { %p608_p1 = pnand %p607_p12, %p601_p6 }
  0x24   : > { %611 = shalt.err (!%p608_p1)
}
  0x25   : > { %s612_s4 = scalar_lea.vmem %s849_s8, 512  ;;  %s745_s5 = smov [#allocation2]  }
  0x26   : > { %p613_p2 = scmp.ne.s32.totalorder %s849_s8, %s612_s4  ;;  %s617_s7 = sshll.u32 %s745_s5, 4  ;;  %s618_s7 = int_to_ptr.vmem [resolvable:$false] %s617_s7 }
  0x27   : > { %s619_s18 = scalar_lea.vmem %s618_s7, 1024  ;;  %p620_p9 = scmp.lt.s32.totalorder %s849_s8, %s618_s7 }
  0x28   : > { %p615_p5 = pnand %p613_p2, %p599_p3  ;;  %p621_p4 = scmp.lt.s32.totalorder %s619_s18, %s612_s4 }
  0x2a   : > { %p616_p11 = pneg %p615_p5  ;;  %p622_p7 = por %p621_p4, %p620_p9 }
  0x2c   : > { %p623_p10 = pnand %p622_p7, %p616_p11 }
  0x2e   : > { %626 = shalt.err (!%p623_p10)
}
  0x2f   : > { %s746_s11 = smov 128   ;;  %s747_s19 = smov 8  }
  0x30   : > { %522 = dma.hbm_to_vmem [thread:$0]  (!%p853_p0), %s845_s6, 512, %s849_s8, %s161_s10, %s746_s11, %s746_s11, %s747_s19  }
  0x31   : > { %p202_p9 = scmp.lt.s32.totalorder %s743_s17, 3  ;;  %s895_s23 = scalar_lea.hbm %s1025_s1, %s511_s30 }
  0x32   : > { %p1035_p11 = scmp.ge.s32.totalorder %s743_s17, 1  ;;  %s186_s5 = scalar_lea.vmem [#allocation5], %s495_s29 }
  0x33   : > { %s194_s7 = sshll.u32 %s186_s5, 4  ;;  %s183_s6 = scalar_lea.sflag [#allocation6], %s836_s28  ;;  %s905_s7 = int_to_ptr.vmem [resolvable:$true] %s194_s7 }
  0x34   : > { %p899_p12 = pnand %p1035_p11, %p202_p9  ;;  %s627_s8 = scalar_lea.hbm %s895_s23, 512 }
  0x35   : > { %p628_p1 = scmp.ne.s32.totalorder %s895_s23, %s627_s8  ;;  %s632_s18 = scalar_lea.hbm %s1025_s1, 1024 }
  0x36   : > { %p633_p2 = scmp.lt.u32.totalorder %s895_s23, %s1025_s1  ;;  %p634_p5 = scmp.lt.u32.totalorder %s632_s18, %s627_s8 }
  0x37   : > { %p630_p6 = pnand %p628_p1, %p599_p3  ;;  %p636_p7 = scmp.lt.u32.totalorder %s627_s8, %s895_s23 }
  0x38   : > { %p635_p4 = por %p634_p5, %p633_p2 }
  0x39   : > { %p631_p13 = pneg %p630_p6 }
  0x3a   : > { %p637_p10 = por %p636_p7, %p635_p4 }
  0x3c   : > { %p638_p9 = pnand %p637_p10, %p631_p13 }
  0x3e   : > { %641 = shalt.err (!%p638_p9)
}
  0x3f   : > { %s642_s29 = scalar_lea.vmem %s905_s7, 512  ;;  %s748_s5 = smov [#allocation5]  }
  0x40   : > { %p643_p11 = scmp.ne.s32.totalorder %s905_s7, %s642_s29  ;;  %s647_s30 = sshll.u32 %s748_s5, 4  ;;  %s648_s30 = int_to_ptr.vmem [resolvable:$false] %s647_s30 }
  0x41   : > { %s649_s10 = scalar_lea.vmem %s648_s30, 1024  ;;  %p650_p8 = scmp.lt.s32.totalorder %s905_s7, %s648_s30 }
  0x42   : > { %p645_p1 = pnand %p643_p11, %p599_p3  ;;  %p651_p2 = scmp.lt.s32.totalorder %s649_s10, %s642_s29 }
  0x44   : > { %p646_p6 = pneg %p645_p1  ;;  %p652_p5 = por %p651_p2, %p650_p8 }
  0x46   : > { %p653_p4 = pnand %p652_p5, %p646_p6 }
  0x48   : > { %656 = shalt.err (!%p653_p4)
}
  0x49   : > { %525 = dma.hbm_to_vmem [thread:$0]  (!%p853_p0), %s895_s23, 512, %s905_s7, %s183_s6, %s746_s11, %s746_s11, %s747_s19  }
  0x4a   : > { %206 = sbr.rel (%p899_p12) target bundleno = 254 (0xfe), region = 32  ;;  %s939_s8 = sand.u32 (!%p899_p12), 1, %s727_s13  }
  0x4b   : > { %s502_s18 = sshll.u32 (!%p899_p12), %s939_s8, 5  ;;  %s209_s21 = scalar_lea.sflag (!%p899_p12), [#allocation3], %s939_s8 }
  0x4c   : > { %s212_s9 = scalar_lea.vmem (!%p899_p12), [#allocation2], %s502_s18  ;;  %p1037_p8 = scmp.ne.s32.totalorder (!%p899_p12), %s1031_s24, 0 }
  0x51   : > { %710 = dma.done.wait (%p1037_p8), %s209_s21, 512  }
  0x52   : > { %712 = vsyncadd (%p1037_p8), %s209_s21, 4294966784  ;;  %s218_s28 = scalar_lea.sflag [#allocation6], %s939_s8  ;;  %s948_s11 = scalar_lea.vmem [#allocation5], %s502_s18 }
  0x53   : > { %714 = dma.done.wait (%p1037_p8), %s218_s28, 512  }
  0x54   : > { %716 = vsyncadd (%p1037_p8), %s218_s28, 4294966784  ;;  %v749_v0 = vmov 0   ;;  %v506_v1 = vld [vmem:[%s1026_s2 + $0x2] ss:$0 sm:$0xff]  ;;  %v504_v2 = vld [vmem:[%s1026_s2] ss:$0 sm:$0xff] }
  0x55   : > { %584 = vset.pattern.permute.xlu1 %v749_v0  ;;  %583 = vset.pattern.permute.xlu0 %v749_v0  ;;  %v507_v3 = vld [vmem:[%s1026_s2 + $0x3] ss:$0 sm:$0xff]  ;;  %v505_v4 = vld [vmem:[%s1026_s2 + $0x1] ss:$0 sm:$0xff]  ;;  %v249_v6 = vld [vmem:[%s212_s9 + $0x8] sm:$0xff]  ;;  %s508_s5 = sshll.u32 %s735_s15, 4 }
  0x56   : > { %346 = vperm.xlu1 %584, %v506_v1   ;;  %338 = vperm.xlu0 %583, %v504_v2   ;;  %v248_v5 = vld [vmem:[%s212_s9] sm:$0xff]  ;;  %v250_v7 = vld [vmem:[%s212_s9 + $0x10] sm:$0xff]  ;;  %v251_v8 = vld [vmem:[%s212_s9 + $0x18] sm:$0xff]  ;;  %s247_s30 = scalar_lea.vmem [#allocation7], %s939_s8  ;;  %s975_s9 = scalar_lea.hbm %s1027_s3, %s508_s5 }
  0x57   : > { %v260_v9 = vmax.f32 %v248_v5, %v249_v6  ;;  %v261_v10 = vmax.f32 %v250_v7, %v251_v8  ;;  %v252_v44 = vld [vmem:[%s948_s11] sm:$0xff]  ;;  %v254_v53 = vld [vmem:[%s948_s11 + $0x10] sm:$0xff]  ;;  %v253_v57 = vld [vmem:[%s948_s11 + $0x8] sm:$0xff]  ;;  %s389_s10 = sshll.u32 %s247_s30, 4  ;;  %s376_s28 = scalar_lea.sflag [#allocation4], %s939_s8  ;;  %s977_s10 = int_to_ptr.vmem [resolvable:$true] %s389_s10 }
  0x58   : > { %v313_v54 = vsub.f32 0.0, %v252_v44  ;;  %v255_v60 = vld [vmem:[%s948_s11 + $0x18] sm:$0xff]  ;;  %s657_s11 = scalar_lea.vmem %s977_s10, 16  ;;  %p1038_p3 = scmp.ne.s32.totalorder %s1032_s25, 0 }
  0x59   : > { %v262_v11 = vmax.f32 %v260_v9, %v261_v10  ;;  %p658_p0 = scmp.ne.s32.totalorder %s977_s10, %s657_s11  ;;  %s750_s15 = smov [#allocation7]  }
  0x5a   : > { %350 = vperm.xlu1 %584, %v507_v3   ;;  %342 = vperm.xlu0 %583, %v505_v4   ;;  %v315_v3 = vsub.f32 0.0, %v254_v53  ;;  %v314_v4 = vsub.f32 0.0, %v253_v57  ;;  %s661_s19 = sshll.u32 %s750_s15, 4  ;;  %s662_s19 = int_to_ptr.vmem [resolvable:$false] %s661_s19 }
  0x5b   : > { %v263_v12 = vsub.f32 %v248_v5, %v262_v11  ;;  %v264_v13 = vsub.f32 %v249_v6, %v262_v11  ;;  %v265_v15 = vsub.f32 %v250_v7, %v262_v11  ;;  %v266_v17 = vsub.f32 %v251_v8, %v262_v11  ;;  %p659_p12 = pnand %p658_p0, %p1038_p3  ;;  %s663_s23 = scalar_lea.vmem %s662_s19, 32 }
  0x5c   : > { %v316_v6 = vsub.f32 0.0, %v255_v60  ;;  %p664_p7 = scmp.lt.s32.totalorder %s977_s10, %s662_s19  ;;  %p665_p10 = scmp.lt.s32.totalorder %s663_s23, %s657_s11 }
  0x5d   : > { %v267_v14 = vmul.f32 1.442695, %v263_v12  ;;  %v269_v16 = vmul.f32 1.442695, %v264_v13  ;;  %v271_v18 = vmul.f32 1.442695, %v265_v15  ;;  %p660_p13 = pneg %p659_p12 }
  0x5e   : > { %v273_v19 = vmul.f32 1.442695, %v266_v17  ;;  %p666_p9 = por %p665_p10, %p664_p7 }
  0x5f   : > { %585 = vpow2.f32 %v267_v14 }
  0x60   : > { %587 = vpow2.f32 %v269_v16  ;;  %p667_p11 = pnand %p666_p9, %p660_p13 }
  0x61   : > { %589 = vpow2.f32 %v271_v18 }
  0x62   : > { %591 = vpow2.f32 %v273_v19 }
  0x69   : > { %v586_v20 = vpop.eup %585 }
  0x6a   : > { %v588_v21 = vpop.eup %587 }
  0x6b   : > { %v275_v22 = vadd.f32 %v588_v21, %v586_v20  ;;  %v590_v23 = vpop.eup %589 }
  0x6c   : > { %v592_v25 = vpop.eup %591 }
  0x6d   : > { %v276_v24 = vadd.f32 %v590_v23, %v275_v22 }
  0x6f   : > { %v277_v26 = vadd.f32 %v592_v25, %v276_v24 }
  0x71   : > { %593 = vrcp.f32 %v277_v26 }
  0x72   : > { %595 = vlog2.f32 %v277_v26 }
  0x7b   : > { %v594_v27 = vpop.eup %593 }
  0x7c   : > { %v279_v28 = vmul.f32 %v594_v27, %v586_v20  ;;  %v280_v29 = vmul.f32 %v594_v27, %v588_v21  ;;  %v596_v30 = vpop.eup %595  ;;  %v281_v31 = vmul.f32 %v594_v27, %v590_v23  ;;  %v282_v32 = vmul.f32 %v594_v27, %v592_v25 }
  0x7d   : > { %v292_v33 = vmul.f32 0.6931472, %v596_v30 }
  0x7e   : > { %v283_v34 = vmax.f32 %v279_v28, 1e-08  ;;  %v284_v35 = vmax.f32 %v280_v29, 1e-08  ;;  %v285_v36 = vmax.f32 %v281_v31, 1e-08 }
  0x7f   : > { %v286_v37 = vmax.f32 %v282_v32, 1e-08  ;;  %v293_v39 = vsub.f32 %v263_v12, %v292_v33  ;;  %v294_v41 = vsub.f32 %v264_v13, %v292_v33  ;;  %v295_v43 = vsub.f32 %v265_v15, %v292_v33 }
  0x80   : > { %v287_v38 = vmin.f32 %v283_v34, 1.0  ;;  %v288_v40 = vmin.f32 %v284_v35, 1.0  ;;  %v289_v42 = vmin.f32 %v285_v36, 1.0  ;;  %v296_v46 = vsub.f32 %v266_v17, %v292_v33 }
  0x81   : > { %v290_v45 = vmin.f32 %v286_v37, 1.0  ;;  %v297_v47 = vmax.f32 %v293_v39, -18.420681  ;;  %v298_v49 = vmax.f32 %v294_v41, -18.420681 }
  0x82   : > { %v305_v48 = vsub.f32 1.0, %v287_v38  ;;  %v306_v50 = vsub.f32 1.0, %v288_v40  ;;  %v299_v51 = vmax.f32 %v295_v43, -18.420681  ;;  %v307_v52 = vsub.f32 1.0, %v289_v42 }
  0x83   : > { %v300_v55 = vmax.f32 %v296_v46, -18.420681  ;;  %v308_v56 = vsub.f32 1.0, %v290_v45  ;;  %v301_v58 = vmin.f32 %v297_v47, 0.0  ;;  %v302_v61 = vmin.f32 %v298_v49, 0.0 }
  0x84   : > { %v309_v59 = vmul.f32 %v305_v48, %v305_v48  ;;  %v310_v62 = vmul.f32 %v306_v50, %v306_v50  ;;  %v303_v1 = vmin.f32 %v299_v51, 0.0  ;;  %v311_v2 = vmul.f32 %v307_v52, %v307_v52 }
  0x85   : > { %v304_v5 = vmin.f32 %v300_v55, 0.0  ;;  %v312_v9 = vmul.f32 %v308_v56, %v308_v56 }
  0x86   : > { %v357_v8 = vmul.f32 %v309_v59, %v301_v58  ;;  %v358_v10 = vmul.f32 %v310_v62, %v302_v61  ;;  %v359_v14 = vmul.f32 %v311_v2, %v303_v1 }
  0x87   : > { %v360_v18 = vmul.f32 %v312_v9, %v304_v5 }
  0xd5   : > { %v347_v63 = vpop.permute.xlu1 %346  ;;  %v339_v0 = vpop.permute.xlu0 %338 }
  0xd6   : > { %v353_v7 = vmul.f32 %v339_v0, %v313_v54  ;;  %v355_v13 = vmul.f32 %v347_v63, %v315_v3 }
  0xd8   : > { %v361_v16 = vmul.f32 %v357_v8, %v353_v7  ;;  %v363_v20 = vmul.f32 %v359_v14, %v355_v13 }
  0xd9   : > { %v351_v11 = vpop.permute.xlu1 %350  ;;  %v343_v12 = vpop.permute.xlu0 %342 }
  0xda   : > { %v354_v15 = vmul.f32 %v343_v12, %v314_v4  ;;  %v356_v17 = vmul.f32 %v351_v11, %v316_v6 }
  0xdc   : > { %v362_v19 = vmul.f32 %v358_v10, %v354_v15  ;;  %v364_v22 = vmul.f32 %v360_v18, %v356_v17 }
  0xde   : > { %v365_v21 = vadd.f32 %v362_v19, %v361_v16 }
  0xe0   : > { %v366_v23 = vadd.f32 %v365_v21, %v363_v20 }
  0xe2   : > { %v367_v24 = vadd.f32 %v366_v23, %v364_v22 }
  0xe4   : > { %v368_v25 = vrot.slane %v367_v24, 4 }
  0xe6   : > { %v369_v26 = vadd.f32 %v368_v25, %v367_v24 }
  0xe8   : > { %v370_v27 = vrot.slane %v369_v26, 2 }
  0xea   : > { %v371_v28 = vadd.f32 %v370_v27, %v369_v26 }
  0xec   : > { %v372_v29 = vrot.slane %v371_v28, 1 }
  0xee   : > { %v373_v30 = vadd.f32 %v372_v29, %v371_v28 }
  0xf0   : > { %374 = vst [vmem:[%s247_s30] sm:$0x1] %v373_v30 }
  0xf1   : > { %670 = shalt.err (!%p667_p11)
}
  0xf2   : > { %s671_s8 = scalar_lea.hbm %s975_s9, 16  ;;  %s675_s6 = scalar_lea.hbm %s1027_s3, 32 }
  0xf3   : > { %p672_p1 = scmp.ne.s32.totalorder %s975_s9, %s671_s8  ;;  %p676_p5 = scmp.lt.u32.totalorder %s975_s9, %s1027_s3 }
  0xf4   : > { %p677_p4 = scmp.lt.u32.totalorder %s675_s6, %s671_s8  ;;  %p679_p0 = scmp.lt.u32.totalorder %s671_s8, %s975_s9 }
  0xf5   : > { %p673_p6 = pnand %p672_p1, %p1038_p3 }
  0xf6   : > { %p678_p8 = por %p677_p4, %p676_p5 }
  0xf7   : > { %p674_p2 = pneg %p673_p6 }
  0xf8   : > { %p680_p12 = por %p679_p0, %p678_p8 }
  0xfa   : > { %p681_p13 = pnand %p680_p12, %p674_p2 }
  0xfc   : > { %684 = shalt.err (!%p681_p13)
}
  0xfd   : > { %517 = dma.vmem_to_hbm [thread:$0]  (%p1038_p3), %s977_s10, 16, %s975_s9, %s376_s28  }
  0xfe PF: > { %s401_s24 = sand.u32 1, %s723_s12   ;;  %p1039_p7 = scmp.ne.s32.totalorder %s1033_s27, 0 }
  0xff   : > { %p1040_p10 = scmp.ge.s32.totalorder %s743_s17, 2  ;;  %s402_s5 = scalar_lea.sflag [#allocation4], %s401_s24 }
 0x101   : > { %p527_p9 = pnand %p1040_p10, %p1039_p7 }
 0x103   : > { %718 = dma.done.wait (!%p527_p9), %s402_s5, 16  }
 0x104   : > { %720 = vsyncadd (!%p527_p9), %s402_s5, 4294967280  ;;  %s22_s17 = sadd.s32 1, %s743_s17   ;;  %s1041_s12 = smov %s727_s13 }
 0x105   : > { %p19_p11 = scmp.ge.s32.totalorder %s22_s17, 4   ;;  %s1042_s13 = smov %s731_s14 }
 0x106   : > { %s1043_s14 = smov %s827_s26  ;;  %s1044_s15 = smov %s739_s16 }
 0x107   : > { %s1045_s16 = smov %s1047_s20  ;;  %21 = sbr.rel (!%p19_p11) target bundleno = 8 (0x8), region = 90 }
 0x10e   :  { %406 = vsyncpa [#allocation3], 1 }
 0x10f   :  { %408 = vsyncpa [#allocation3 + $0x1], 1 }
 0x110   :  { %409 = vsyncpa [#allocation6], 1 }
 0x111   :  { %411 = vsyncpa [#allocation6 + $0x1], 1 }
 0x112   :  { %412 = vsyncpa [#allocation4], 1 }
 0x113   :  { %414 = vsyncpa [#allocation4 + $0x1], 1 }

</bundles_post_ra>
